<compile_context>
chip_gen: v5e
topology: v5e:2x2
jax: 0.10.0
libtpu: 0.0.40
codegen_flags: <defaults>
</compile_context>

<pallas_src>
import functools

import jax
import jax.numpy as jnp
from jax import lax
from jax.experimental import pallas as pl
from jax.experimental.pallas import tpu as pltpu

_LANES = 128
_SUBLANES = 8
_CHUNK_ROWS = 256           # strip-mining sub-chunk (multiple of 32 -> ok for int8/bf16)
_VMEM_BUDGET = 12 << 20     # 2 inputs x 2 pipeline buffers must fit in this


def _cdiv(a, b):
    return -(-a // b)


def _round_up(a, b):
    return _cdiv(a, b) * b


def _sublane_align(dtype):
    itemsize = jnp.dtype(dtype).itemsize
    if itemsize >= 4:
        return _SUBLANES
    return _SUBLANES * (4 // itemsize)   # bf16 -> 16, int8/bool -> 32


def _num_tensorcores():
    """Best-effort TensorCores-per-chip query; defaults to 1 (safe everywhere)."""
    try:
        info = pltpu.get_tpu_info()
    except Exception:
        return 1
    for name in ("num_tensorcores", "tensorcores_per_chip", "cores_per_chip", "num_cores"):
        v = getattr(info, name, None)
        if isinstance(v, int) and v >= 1:
            return v
    return 1


def _focal_loss_kernel(x_ref, y_ref, acc_ref, *, gamma, a0, a1, use_alpha,
                       chunk_rows, n_chunks, steps, last_block, rem_elems,
                       need_mask):
    c = pl.program_id(0)   # TensorCore split axis
    i = pl.program_id(1)   # streaming / reduction axis
    blk = c * steps + i

    @pl.when(i == 0)
    def _init():
        acc_ref[...] = jnp.zeros_like(acc_ref)

    chunk_elems = chunk_rows * _LANES

    def _chunk_loss(ci):
        r0 = pl.multiple_of(ci * chunk_rows, chunk_rows)
        x = x_ref[pl.ds(r0, chunk_rows), :].astype(jnp.float32)
        y = y_ref[pl.ds(r0, chunk_rows), :].astype(jnp.float32)
        # One shared exp(-|x|) gives both sigmoid(x) and the stable BCE softplus term.
        e = jnp.exp(-jnp.abs(x))                              # EUP
        inv = pl.reciprocal(1.0 + e, approx=True)             # EUP vrcp, no refinement
        p = jnp.where(x >= 0.0, inv, e * inv)                 # == sigmoid(x)
        ce = jnp.maximum(x, 0.0) - x * y + jnp.log1p(e)       # EUP log1p
        q = p + y - 2.0 * (p * y)                             # == 1 - p_t
        if gamma == 2.0:       # default: explicit square, no exp/log pow
            focal = q * q
        elif gamma == 1.0:
            focal = q
        elif gamma == 0.0:
            focal = jnp.ones_like(q)
        else:
            focal = q ** gamma
        loss = ce * focal
        if use_alpha:
            loss = (a0 + a1 * y) * loss                        # alpha_t as one FMA
        return loss

    def _fold(v):
        # Sublane-aligned partial sum (pure VALU adds) into one (8,128) vreg.
        return jnp.sum(v.reshape(chunk_rows // _SUBLANES, _SUBLANES, _LANES), axis=0)

    zero = jnp.zeros((_SUBLANES, _LANES), jnp.float32)

    def _full_body(ci, acc):
        return acc + _fold(_chunk_loss(ci))

    if need_mask:
        @pl.when(blk != last_block)
        def _full_blocks():
            acc_ref[...] += lax.fori_loop(0, n_chunks, _full_body, zero, unroll=True)

        @pl.when(blk == last_block)
        def _masked_block():
            # Masking work (iotas / compare / select) only exists in this one block.
            row_ids = lax.broadcasted_iota(jnp.int32, (chunk_rows, _LANES), 0)
            lane_ids = lax.broadcasted_iota(jnp.int32, (chunk_rows, _LANES), 1)
            local_idx = row_ids * _LANES + lane_ids            # block-local, no overflow

            def _masked_body(ci, acc):
                keep = local_idx < (rem_elems - ci * chunk_elems)
                # Garbage (possibly NaN/Inf) from the partial DMA / pad lanes is
                # discarded by the select and never reaches the accumulator.
                return acc + _fold(jnp.where(keep, _chunk_loss(ci), 0.0))

            acc_ref[...] += lax.fori_loop(0, n_chunks, _masked_body, zero, unroll=True)
    else:
        acc_ref[...] += lax.fori_loop(0, n_chunks, _full_body, zero, unroll=True)


def focal_loss(x, y, alpha=-1.0, gamma=2.0, reduction="mean", tile_rows=4096):
    """Pallas sigmoid focal loss.

    x, y: same-shape arrays (e.g. NCHW logits / targets). Inputs are streamed in their
    caller dtype (bf16 logits / int8 targets stay narrow in HBM); the f32 cast happens
    in-kernel under the DMA.
    """
    assert x.shape == y.shape, "logits and targets must have the same shape"
    n_elems = int(x.size)
    assert n_elems > 0
    if reduction not in ("mean", "sum"):
        # TODO(synk): reduction='none' would need an elementwise-output variant.
        raise NotImplementedError("reduction='none' not implemented in Pallas kernel")

    xf = x.reshape(-1)
    yf = y.reshape(-1)

    rows = _cdiv(n_elems, _LANES)
    lane_pad = rows * _LANES - n_elems
    if lane_pad:
        # < 128 elements of padding, only when numel isn't lane-aligned; padded
        # elements are discarded by the last-block index mask.
        xf = jnp.pad(xf, (0, lane_pad))
        yf = jnp.pad(yf, (0, lane_pad))
    x2 = xf.reshape(rows, _LANES)
    y2 = yf.reshape(rows, _LANES)

    align = max(_sublane_align(x2.dtype), _sublane_align(y2.dtype))

    # Tile sizing: big lane-dense blocks; double-buffered inputs capped at the
    # _VMEM_BUDGET so no vmem_limit escalation is needed on any chip generation.
    bytes_per_row = _LANES * (x2.dtype.itemsize + y2.dtype.itemsize)
    tr_cap = max(align, int(_VMEM_BUDGET // (2 * bytes_per_row)))
    tr = max(1, min(int(tile_rows), rows, tr_cap))
    if tr >= _CHUNK_ROWS:
        tr = (tr // _CHUNK_ROWS) * _CHUNK_ROWS
        chunk_rows = _CHUNK_ROWS
    else:
        tr = _round_up(tr, align)
        chunk_rows = tr
        if rows < tr:
            # Tiny input: pad a handful of rows so the single block matches the array
            # exactly (cheap: the whole array is at most a few hundred KiB here).
            x2 = jnp.pad(x2, ((0, tr - rows), (0, 0)))
            y2 = jnp.pad(y2, ((0, tr - rows), (0, 0)))
            rows = tr

    num_blocks = _cdiv(rows, tr)
    need_mask = (num_blocks * tr * _LANES) != n_elems
    last_block = num_blocks - 1
    rem_elems = n_elems - last_block * tr * _LANES   # valid elements in the last block

    # 2-TensorCore split only on multi-TC chips (e.g. v7x) with enough even work;
    # plain "parallel" is codegen-neutral, so single-TC chips just stream.
    multicore = (_num_tensorcores() >= 2
                 and hasattr(pltpu, "CORE_PARALLEL") and hasattr(pltpu, "ARBITRARY")
                 and num_blocks >= 8 and num_blocks % 2 == 0)
    n_split = 2 if multicore else 1
    steps = num_blocks // n_split
    if multicore:
        dims = (pltpu.CORE_PARALLEL, pltpu.ARBITRARY)
    else:
        dims = ("arbitrary", "arbitrary")

    kernel = functools.partial(
        _focal_loss_kernel,
        gamma=float(gamma),
        a0=float(1.0 - alpha), a1=float(2.0 * alpha - 1.0),
        use_alpha=bool(alpha >= 0.0),
        chunk_rows=int(chunk_rows), n_chunks=int(tr // chunk_rows),
        steps=int(steps), last_block=int(last_block), rem_elems=int(rem_elems),
        need_mask=bool(need_mask))

    partials = pl.pallas_call(
        kernel,
        out_shape=jax.ShapeDtypeStruct((n_split * _SUBLANES, _LANES), jnp.float32),
        grid_spec=pltpu.PrefetchScalarGridSpec(
            num_scalar_prefetch=0,
            grid=(n_split, steps),
            in_specs=[
                pl.BlockSpec((tr, _LANES), lambda c, i: (c * steps + i, 0)),
                pl.BlockSpec((tr, _LANES), lambda c, i: (c * steps + i, 0)),
            ],
            # Lane-dense (8,128) partial-sum slab per split; resident across the
            # streaming axis (accumulator pattern).
            out_specs=pl.BlockSpec((_SUBLANES, _LANES), lambda c, i: (c, 0)),
        ),
        compiler_params=pltpu.CompilerParams(dimension_semantics=dims),
    )(x2, y2)

    total = jnp.sum(partials)   # single tiny cross-lane reduce outside the kernel
    if reduction == "mean":
        return total / jnp.float32(n_elems)
    return total


def _focal_loss_ref(x, y, alpha=-1.0, gamma=2.0):
    x = x.astype(jnp.float32)
    y = y.astype(jnp.float32)
    p = jax.nn.sigmoid(x)
    ce = jnp.maximum(x, 0.0) - x * y + jnp.log1p(jnp.exp(-jnp.abs(x)))
    p_t = p * y + (1.0 - p) * (1.0 - y)
    loss = ce * (1.0 - p_t) ** gamma
    if alpha >= 0.0:
        alpha_t = alpha * y + (1.0 - alpha) * (1.0 - y)
        loss = alpha_t * loss
    return jnp.mean(loss)


if __name__ == "__main__":
    key = jax.random.PRNGKey(0)
    kx, ky, kx2, ky2, kx3, ky3 = jax.random.split(key, 6)

    # Approx reciprocal (EUP vrcp, ~2^-12 rel error) only perturbs the focal weight,
    # not the CE term; tolerances below account for that.
    RTOL, ATOL = 5e-3, 2e-5

    # 1) Module defaults (alpha=-1, gamma=2): NCHW logits / binary targets,
    #    rows=16 -> single exact block, no mask path.
    x = jax.random.normal(kx, (2, 4, 16, 16), dtype=jnp.float32)
    y = (jax.random.uniform(ky, (2, 4, 16, 16)) > 0.5).astype(jnp.float32)
    out = jax.block_until_ready(focal_loss(x, y, alpha=-1.0, gamma=2.0))
    ref = _focal_loss_ref(x, y, alpha=-1.0, gamma=2.0)
    assert jnp.allclose(out, ref, rtol=RTOL, atol=ATOL), (out, ref)

    # 2) Alpha-weighting branch.
    out = jax.block_until_ready(focal_loss(x, y, alpha=0.25, gamma=2.0))
    ref = _focal_loss_ref(x, y, alpha=0.25, gamma=2.0)
    assert jnp.allclose(out, ref, rtol=RTOL, atol=ATOL), (out, ref)

    # 3) Multi-block with a partial last block (no jnp.pad of the body) + general gamma.
    xb = jax.random.normal(kx2, (2, 4, 40, 40), dtype=jnp.float32)
    yb = (jax.random.uniform(ky2, (2, 4, 40, 40)) > 0.5).astype(jnp.float32)
    out = jax.block_until_ready(focal_loss(xb, yb, alpha=0.5, gamma=1.5, tile_rows=32))
    ref = _focal_loss_ref(xb, yb, alpha=0.5, gamma=1.5)
    assert jnp.allclose(out, ref, rtol=RTOL, atol=ATOL), (out, ref)

    # 4) Non-lane-aligned numel (105 elements): lane pad + tiny row pad + mask.
    xc = jax.random.normal(kx3, (3, 5, 7), dtype=jnp.float32)
    yc = (jax.random.uniform(ky3, (3, 5, 7)) > 0.5).astype(jnp.float32)
    out = jax.block_until_ready(focal_loss(xc, yc, alpha=-1.0, gamma=2.0))
    ref = _focal_loss_ref(xc, yc, alpha=-1.0, gamma=2.0)
    assert jnp.allclose(out, ref, rtol=RTOL, atol=ATOL), (out, ref)

    print("KERNEL_OK")
</pallas_src>

<mosaic_0001>
module attributes {stable_mosaic.version = 11 : i64} {
  func.func @_focal_loss_kernel(%arg0: i32, %arg1: i32, %arg2: memref<16x128xf32, #tpu.memory_space<vmem>>, %arg3: memref<16x128xf32, #tpu.memory_space<vmem>>, %arg4: memref<8x128xf32, #tpu.memory_space<vmem>>) attributes {dimension_semantics = [#tpu.dimension_semantics<arbitrary>, #tpu.dimension_semantics<arbitrary>], iteration_bounds = array<i64: 1, 1>, scalar_prefetch = 0 : i64, scratch_operands = 0 : i64, tpu.core_type = #tpu.core_type<tc>, window_params = [{transform_indices = @transform_0, window_bounds = array<i64: 16, 128>}, {transform_indices = @transform_1, window_bounds = array<i64: 16, 128>}, {transform_indices = @transform_2, window_bounds = array<i64: 8, 128>}]} {
    %c0_i32 = arith.constant 0 : i32
    %0 = arith.cmpi eq, %arg1, %c0_i32 : i32
    %1 = arith.extui %0 : i1 to i32
    %c0_i32_0 = arith.constant 0 : i32
    %2 = arith.cmpi ne, %1, %c0_i32_0 : i32
    scf.if %2 {
      %cst_13 = arith.constant 0.000000e+00 : f32
      %40 = vector.broadcast %cst_13 : f32 to vector<8x128xf32>
      %c0_14 = arith.constant 0 : index
      %c0_15 = arith.constant 0 : index
      %41 = vector.load %arg4[%c0_14, %c0_15] : memref<8x128xf32, #tpu.memory_space<vmem>>, vector<8x128xf32>
      tpu.vector_store %arg4[%c0_14, %c0_15], %40 {strides = array<i32>} : memref<8x128xf32, #tpu.memory_space<vmem>>, vector<8x128xf32>,
    } else {
    }
    %cst = arith.constant 0.000000e+00 : f32
    %3 = vector.broadcast %cst : f32 to vector<8x128xf32>
    %c0 = arith.constant 0 : index
    %c0_1 = arith.constant 0 : index
    %4 = vector.load %arg4[%c0, %c0_1] : memref<8x128xf32, #tpu.memory_space<vmem>>, vector<8x128xf32>
    %c0_i32_2 = arith.constant 0 : i32
    %c16_i32 = arith.constant 16 : i32
    %5 = arith.muli %c0_i32_2, %c16_i32 : i32
    %6 = tpu.assume_multiple %5, 16 : i32
    %7 = arith.index_cast %6 : i32 to index
    %c0_3 = arith.constant 0 : index
    %8 = vector.load %arg2[%7, %c0_3] : memref<16x128xf32, #tpu.memory_space<vmem>>, vector<16x128xf32>
    %9 = arith.index_cast %6 : i32 to index
    %c0_4 = arith.constant 0 : index
    %10 = vector.load %arg3[%9, %c0_4] : memref<16x128xf32, #tpu.memory_space<vmem>>, vector<16x128xf32>
    %11 = math.absf %8 : vector<16x128xf32>
    %cst_5 = arith.constant 0.000000e+00 : f32
    %12 = vector.broadcast %cst_5 : f32 to vector<16x128xf32>
    %13 = arith.subf %12, %11 : vector<16x128xf32>
    %14 = math.exp %13 : vector<16x128xf32>
    %cst_6 = arith.constant 1.000000e+00 : f32
    %15 = vector.broadcast %cst_6 : f32 to vector<16x128xf32>
    %16 = arith.addf %15, %14 : vector<16x128xf32>
    %17 = tpu.reciprocal %16 {approx = true} : vector<16x128xf32> -> vector<16x128xf32>
    %cst_7 = arith.constant 0.000000e+00 : f32
    %18 = vector.broadcast %cst_7 : f32 to vector<16x128xf32>
    %19 = arith.cmpf oge, %8, %18 : vector<16x128xf32>
    %20 = arith.mulf %14, %17 : vector<16x128xf32>
    %21 = arith.select %19, %17, %20 : vector<16x128xi1>, vector<16x128xf32>
    %cst_8 = arith.constant 0.000000e+00 : f32
    %22 = vector.broadcast %cst_8 : f32 to vector<16x128xf32>
    %23 = arith.maximumf %8, %22 : vector<16x128xf32>
    %24 = arith.mulf %8, %10 : vector<16x128xf32>
    %25 = arith.subf %23, %24 : vector<16x128xf32>
    %26 = math.log1p %14 : vector<16x128xf32>
    %27 = arith.addf %25, %26 : vector<16x128xf32>
    %28 = arith.addf %21, %10 : vector<16x128xf32>
    %29 = arith.mulf %21, %10 : vector<16x128xf32>
    %cst_9 = arith.constant 2.000000e+00 : f32
    %30 = vector.broadcast %cst_9 : f32 to vector<16x128xf32>
    %31 = arith.mulf %30, %29 : vector<16x128xf32>
    %32 = arith.subf %28, %31 : vector<16x128xf32>
    %33 = arith.mulf %32, %32 : vector<16x128xf32>
    %34 = arith.mulf %27, %33 : vector<16x128xf32>
    %35 = vector.shape_cast %34 : vector<16x128xf32> to vector<2x8x128xf32>
    %cst_10 = arith.constant dense<0.000000e+00> : vector<8x128xf32>
    %36 = vector.multi_reduction <add>, %35, %cst_10 [0] : vector<2x8x128xf32> to vector<8x128xf32>
    %37 = arith.addf %3, %36 : vector<8x128xf32>
    %c1_i32 = arith.constant 1 : i32
    %38 = arith.addf %4, %37 : vector<8x128xf32>
    %c0_11 = arith.constant 0 : index
    %c0_12 = arith.constant 0 : index
    %39 = vector.load %arg4[%c0_11, %c0_12] : memref<8x128xf32, #tpu.memory_space<vmem>>, vector<8x128xf32>
    tpu.vector_store %arg4[%c0_11, %c0_12], %38 {strides = array<i32>} : memref<8x128xf32, #tpu.memory_space<vmem>>, vector<8x128xf32>,
    return
  }
  func.func @transform_0(%arg0: i32, %arg1: i32) -> (i32, i32) {
    %c1_i32 = arith.constant 1 : i32
    %0 = arith.muli %arg0, %c1_i32 : i32
    %1 = arith.addi %0, %arg1 : i32
    %c0_i32 = arith.constant 0 : i32
    %c0_i32_0 = arith.constant 0 : i32
    return %1, %c0_i32 : i32, i32
  }
  func.func @transform_1(%arg0: i32, %arg1: i32) -> (i32, i32) {
    %c1_i32 = arith.constant 1 : i32
    %0 = arith.muli %arg0, %c1_i32 : i32
    %1 = arith.addi %0, %arg1 : i32
    %c0_i32 = arith.constant 0 : i32
    %c0_i32_0 = arith.constant 0 : i32
    return %1, %c0_i32 : i32, i32
  }
  func.func @transform_2(%arg0: i32, %arg1: i32) -> (i32, i32) {
    %c0_i32 = arith.constant 0 : i32
    %c0_i32_0 = arith.constant 0 : i32
    return %arg0, %c0_i32 : i32, i32
  }
}

</mosaic_0001>

<bundles_post_ra>
// kernel: tpu_custom_call.1
= control target key start
LH: loop header
LB: loop body
LE: loop exit
PB: predicated region body
PF: predicated region fallthrough
CT: control target
= control target key end

     0   :  { %7 = vsyncpa [#allocation3], 0  ;;  %s275_s0 = inlined_call_operand.hbm [shape: f32[16,128], index: 0, kind: input, shape index: {}]   ;;  %s276_s1 = inlined_call_operand.hbm [shape: f32[16,128], index: 1, kind: input, shape index: {}]   ;;  %s277_s2 = inlined_call_operand.hbm [shape: f32[8,128], index: 2, kind: output, shape index: {}]  }
   0x1   :  { %8 = vsyncpa [#allocation6], 0 }
   0x2   :  { %9 = vsyncpa [#allocation4], 0  ;;  %s18_s11 = sshll.u32 %s275_s0, 4  ;;  %s240_s12 = smov [#allocation2]   ;;  %s19_s11 = int_to_ptr.hbm [resolvable:$true] %s18_s11 }
   0x3   :  { %s20_s13 = sshll.u32 %s240_s12, 4  ;;  %s35_s16 = sshll.u32 %s276_s1, 4  ;;  %s21_s13 = int_to_ptr.vmem [resolvable:$true] %s20_s13  ;;  %s36_s16 = int_to_ptr.hbm [resolvable:$true] %s35_s16 }
   0x4   :  { %s241_s17 = smov 128   ;;  %s242_s18 = smov 8  }
   0x5   :  { %26 = dma.hbm_to_vmem [thread:$0]  %s19_s11, 256, %s21_s13, [#allocation3], %s241_s17, %s241_s17, %s242_s18  }
   0x6   :  { %s243_s19 = smov [#allocation5]  }
   0x7   :  { %s37_s20 = sshll.u32 %s243_s19, 4  ;;  %s38_s20 = int_to_ptr.vmem [resolvable:$true] %s37_s20 }
   0x8   :  { %43 = dma.hbm_to_vmem [thread:$0]  %s36_s16, 256, %s38_s20, [#allocation6], %s241_s17, %s241_s17, %s242_s18  }
   0x9   :  { %234 = dma.done.wait [#allocation3], 256  }
   0xa   :  { %235 = vsyncadd [#allocation3], 4294967040 }
   0xb   :  { %236 = dma.done.wait [#allocation6], 256  }
   0xc   :  { %237 = vsyncadd [#allocation6], 4294967040  ;;  %v62_v0 = vld [vmem:[#allocation2] sm:$0xff]  ;;  %v63_v1 = vld [vmem:[#allocation2 + $0x8] sm:$0xff]  ;;  %s244_s0 = smov [#allocation7]   ;;  %s133_s23 = sshll.u32 %s277_s2, 4  ;;  %s134_s23 = int_to_ptr.hbm [resolvable:$true] %s133_s23 }
   0xd   :  { %v66_v2 = vand.u32 2147483647, %v62_v0  ;;  %v67_v3 = vand.u32 2147483647, %v63_v1  ;;  %v64_v15 = vld [vmem:[#allocation5] sm:$0xff]  ;;  %v84_v18 = vmax.f32 %v62_v0, 0.0 }
   0xe   :  { %v86_v19 = vmul.f32 %v64_v15, %v62_v0  ;;  %v65_v22 = vld [vmem:[#allocation5 + $0x8] sm:$0xff]  ;;  %vm78_vm0 = vcmp.ge.f32.partialorder %v62_v0, 0.0  ;;  %vm79_vm1 = vcmp.ge.f32.partialorder %v63_v1, 0.0  ;;  %v85_v25 = vmax.f32 %v63_v1, 0.0  ;;  %s131_s1 = sshll.u32 %s244_s0, 4  ;;  %s132_s1 = int_to_ptr.vmem [resolvable:$true] %s131_s1 }
   0xf   :  { %v68_v4 = vsub.f32 0.0, %v66_v2  ;;  %v69_v5 = vsub.f32 0.0, %v67_v3  ;;  %v87_v26 = vmul.f32 %v65_v22, %v63_v1 }
  0x10   :  { %v88_v34 = vsub.f32 %v84_v18, %v86_v19 }
  0x11   :  { %v70_v6 = vmul.f32 1.442695, %v68_v4  ;;  %v72_v7 = vmul.f32 1.442695, %v69_v5  ;;  %v89_v40 = vsub.f32 %v85_v25, %v87_v26 }
  0x13   :  { %150 = vpow2.f32 %v70_v6 }
  0x14   :  { %152 = vpow2.f32 %v72_v7 }
  0x19   :  { %v151_v8 = vpop.eup %150 }
  0x1a   :  { %v153_v9 = vpop.eup %152  ;;  %v74_v10 = vadd.f32 1.0, %v151_v8  ;;  %v93_v12 = vmul.f32 -0.5, %v151_v8  ;;  %v96_v16 = vand.u32 2147483647, %v151_v8 }
  0x1b   :  { %v75_v11 = vadd.f32 1.0, %v153_v9  ;;  %v102_v13 = vmul.f32 -0.5, %v153_v9  ;;  %v105_v20 = vand.u32 2147483647, %v153_v9 }
  0x1c   :  { %154 = vrcp.f32 %v74_v10  ;;  %v94_v14 = vadd.f32 1.0, %v93_v12  ;;  %vm266_vm2 = vcmp.lt.f32.partialorder %v96_v16, 0.0004427343 }
  0x1d   :  { %156 = vrcp.f32 %v75_v11  ;;  %v103_v17 = vadd.f32 1.0, %v102_v13  ;;  %vm106_vm3 = vcmp.lt.f32.partialorder %v105_v20, 0.0004427343 }
  0x1e   :  { %158 = vlog2.f32 %v74_v10  ;;  %v95_v27 = vmul.f32 %v151_v8, %v94_v14 }
  0x1f   :  { %160 = vlog2.f32 %v75_v11  ;;  %v104_v31 = vmul.f32 %v153_v9, %v103_v17 }
  0x22   :  { %v155_v21 = vpop.eup %154 }
  0x23   :  { %v157_v23 = vpop.eup %156  ;;  %v80_v24 = vmul.f32 %v155_v21, %v151_v8 }
  0x24   :  { %v159_v28 = vpop.eup %158  ;;  %v81_v29 = vmul.f32 %v157_v23, %v153_v9 }
  0x25   :  { %v161_v32 = vpop.eup %160  ;;  %v82_v33 = vsel %vm78_vm0, %v155_v21, %v80_v24  ;;  %v92_v35 = vmul.f32 0.6931472, %v159_v28 }
  0x26   :  { %v83_v36 = vsel %vm79_vm1, %v157_v23, %v81_v29  ;;  %v101_v37 = vmul.f32 0.6931472, %v161_v32  ;;  %v110_v38 = vadd.f32 %v82_v33, %v64_v15  ;;  %v112_v39 = vmul.f32 %v82_v33, %v64_v15 }
  0x27   :  { %v98_v41 = vsel %vm266_vm2, %v95_v27, %v92_v35  ;;  %v111_v42 = vadd.f32 %v83_v36, %v65_v22  ;;  %v113_v43 = vmul.f32 %v83_v36, %v65_v22 }
  0x28   :  { %v107_v44 = vsel %vm106_vm3, %v104_v31, %v101_v37  ;;  %v114_v45 = vmul.f32 2.0, %v112_v39  ;;  %v108_v47 = vadd.f32 %v98_v41, %v88_v34 }
  0x29   :  { %v115_v46 = vmul.f32 2.0, %v113_v43  ;;  %v109_v49 = vadd.f32 %v107_v44, %v89_v40 }
  0x2a   :  { %v116_v48 = vsub.f32 %v110_v38, %v114_v45 }
  0x2b   :  { %v117_v50 = vsub.f32 %v111_v42, %v115_v46 }
  0x2c   :  { %v118_v51 = vmul.f32 %v116_v48, %v116_v48 }
  0x2d   :  { %v119_v52 = vmul.f32 %v117_v50, %v117_v50 }
  0x2e   :  { %v120_v53 = vmul.f32 %v118_v51, %v108_v47 }
  0x2f   :  { %v121_v54 = vmul.f32 %v119_v52, %v109_v49 }
  0x31   :  { %v122_v55 = vadd.f32 %v121_v54, %v120_v53 }
  0x33   :  { %125 = vst [vmem:[#allocation7] sm:$0xff] %v122_v55 }
  0x34   :  { %136 = dma.vmem_to_hbm [thread:$0]  %s132_s1, 128, %s134_s23, [#allocation4]  }
  0x35   :  { %238 = dma.done.wait [#allocation4], 128  }
  0x36   :  { %239 = vsyncadd [#allocation4], 4294967168 }
  0x37   :  { %141 = vsyncpa [#allocation3], 1 }
  0x38   :  { %142 = vsyncpa [#allocation6], 1 }
  0x39   :  { %143 = vsyncpa [#allocation4], 1 }

</bundles_post_ra>
